<compile_context>
chip_gen: v6e
topology: v6e:2x2x1
jax: 0.10.0
libtpu: 0.0.40
codegen_flags: <defaults>
</compile_context>

<pallas_src>
import functools

import jax
import jax.numpy as jnp
from jax.experimental import pallas as pl
from jax.experimental.pallas import tpu as pltpu

# ---- model hyper-params (mirrors SpikingNeuralNetwork.__init__) ----
INPUT_DIM = 32
HIDDEN_L1 = 64
HIDDEN_L2 = 64
HIDDEN_L3 = 32
OUTPUT_DIM = 1
N_TIME_STEPS = 8
BEGIN_EVAL = 2
SPIKE_HIDDEN = 100            # SpikingNeuronLayer(..., n_hidden=100)
SPIKE_HIDDEN_PAD = 128        # padded to a full lane register (zeros beyond 100)
DECAY = 0.9
THRESHOLD = 1.0
PENALTY_THRESHOLD = 1.5
KEEP = 1.0 - PENALTY_THRESHOLD / THRESHOLD   # reset factor applied to firing units

# MXU operand dtype (f32 accumulation kept via preferred_element_type).
MXU_DTYPE = jnp.bfloat16

# ---- packed-parameter slab layout ----
# Weight slab rows (bf16, lane-padded to 128; offsets are bf16 (16,128)-tile aligned):
W1_R = (0, 32)       # spiking layer-1 fc         (32,100) -> (32,128)
OW1_R = (32, 64)     # output_conversion.layer1   (32, 64) -> (32,128)
OW2_R = (64, 192)    # output_conversion.layer2   (64, 64) -> (128,128)
OW3_R = (192, 320)   # output_conversion.layer3   (64, 32) -> (128,128)
OW4_R = (320, 448)   # output_conversion.layerout (32,  1) -> (128,128)
W_SLAB_ROWS = 448
# Bias slab rows (f32, (8,128)):
B1_ROW, W2ROW_ROW, B2_ROW, OB1_ROW, OB2_ROW, OB3_ROW, OB4_ROW = range(7)


def _snn_fused_kernel(x_ref, rand_ref, w_ref, b_ref, out_ref):
    f32 = jnp.float32
    x = x_ref[...]                                    # (B, INPUT_DIM) f32
    B = x.shape[0]
    T = N_TIME_STEPS

    # ================= spiking recurrence (forward_through_time) =================
    # InputDataToSpikingPerceptronLayer: uniform[0,1) * x at every time step.
    # TODO(synk): torch.rand stream is not bit-reproducible; jax.random noise is
    # generated in the wrapper (in-kernel pltpu.prng_* would drop one small DMA).
    xi_all = rand_ref[...] * jnp.tile(x, (T, 1))      # (T*B, INPUT_DIM)

    # Hoisted layer-1 excitation for ALL time steps: one MXU call, bf16 operands.
    w1 = w_ref[W1_R[0]:W1_R[1], :]                    # (32, 128) bf16
    b1 = b_ref[B1_ROW:B1_ROW + 1, :]                  # (1, 128)  f32
    exc1_all = jnp.dot(xi_all.astype(MXU_DTYPE), w1,
                       preferred_element_type=f32) + b1          # (T*B, 128)
    exc1 = exc1_all.reshape(T, B, SPIKE_HIDDEN_PAD)   # leading-axis index per step

    # --- layer-1 recurrence: pure VPU, fully unrolled (T static) ---
    prev_in1 = jnp.zeros((B, SPIKE_HIDDEN_PAD), f32)
    prev_out1 = jnp.zeros((B, SPIKE_HIDDEN_PAD), f32)
    d1_rows = []                                      # DELAYED layer-1 outputs fed to layer 2
    for t in range(T):
        d1_rows.append(prev_out1)
        in1 = exc1[t] + prev_in1 * DECAY
        out1 = jnp.maximum(in1 - THRESHOLD, 0.0)
        prev_in1 = jnp.where(out1 > 0.0, in1 * KEEP, in1)   # reset: mul + select
        prev_out1 = out1

    # --- hoisted layer-2 input excitation: ONE lane reduction for all steps ---
    w2_row = b_ref[W2ROW_ROW:W2ROW_ROW + 1, :]        # (1, 128) f32, zero-padded
    b2 = b_ref[B2_ROW:B2_ROW + 1, 0:1]                # (1, 1)
    d1_all = jnp.concatenate(d1_rows, axis=0)         # (T*B, 128)
    exc2_all = jnp.sum(d1_all * w2_row, axis=-1, keepdims=True) + b2   # (T*B, 1)

    # --- layer-2 recurrence: short VPU-only chain on (B,1) state ---
    # out.append(layer2_state): the DELAYED (pre-update) inner state of layer 2
    # (NOT the delayed spike output), matching SpikingNeuronLayer's return order.
    lane = jax.lax.broadcasted_iota(jnp.int32, (B, SPIKE_HIDDEN_PAD), 1)
    spike_128 = jnp.zeros((B, SPIKE_HIDDEN_PAD), f32)  # spike states land in lanes 1..T
    prev_in2 = jnp.zeros((B, OUTPUT_DIM), f32)
    for t in range(T):
        if t > 0:                                      # delayed state at t == 0 is zero
            spike_128 = spike_128 + jnp.where(lane == (t + 1), prev_in2, 0.0)
        exc2_t = exc2_all[t * B:(t + 1) * B, :]        # (B,1), tile-aligned for B % 8 == 0
        in2 = exc2_t + prev_in2 * DECAY
        out2 = jnp.maximum(in2 - THRESHOLD, 0.0)
        prev_in2 = jnp.where(out2 > 0.0, in2 * KEEP, in2)

    # ================= output_conversion: 4-layer ReLU MLP =================
    # Hidden dims are zero-padded to 128 lanes so every matmul is a dense
    # (B,K)@(K,128) with zero weights/biases in the padded region.
    ow1 = w_ref[OW1_R[0]:OW1_R[1], :]
    ow2 = w_ref[OW2_R[0]:OW2_R[1], :]
    ow3 = w_ref[OW3_R[0]:OW3_R[1], :]
    ow4 = w_ref[OW4_R[0]:OW4_R[1], :]
    ob1 = b_ref[OB1_ROW:OB1_ROW + 1, :]
    ob2 = b_ref[OB2_ROW:OB2_ROW + 1, :]
    ob3 = b_ref[OB3_ROW:OB3_ROW + 1, :]
    ob4 = b_ref[OB4_ROW:OB4_ROW + 1, :]

    h = jnp.maximum(jnp.dot(x.astype(MXU_DTYPE), ow1,
                            preferred_element_type=f32) + ob1, 0.0)
    h = jnp.maximum(jnp.dot(h.astype(MXU_DTYPE), ow2,
                            preferred_element_type=f32) + ob2, 0.0)
    h = jnp.maximum(jnp.dot(h.astype(MXU_DTYPE), ow3,
                            preferred_element_type=f32) + ob3, 0.0)
    mlp = jnp.dot(h.astype(MXU_DTYPE), ow4,
                  preferred_element_type=f32) + ob4    # (B,128), result in lane 0

    # Single lane-dense store: lane 0 = MLP output, lanes 1..T = spike states.
    out_ref[...] = mlp + spike_128


_vmem = functools.partial(pl.BlockSpec, memory_space=pltpu.MemorySpace.VMEM)


def snn_fused_call(x, rand, w_slab, b_slab):
    """One fused, gridless pallas_call: spiking recurrence + output MLP.

    All operands fit comfortably in VMEM (<150 KB), so no pipelining grid is
    needed at this size.
    TODO(synk): for large batches add a "parallel" batch grid (2 TCs on v7x)
    and re-derive batch tiles for the 64 MiB v7x VMEM ceiling.
    """
    B = x.shape[0]
    return pl.pallas_call(
        _snn_fused_kernel,
        out_shape=jax.ShapeDtypeStruct((B, SPIKE_HIDDEN_PAD), jnp.float32),
        in_specs=[_vmem(), _vmem(), _vmem(), _vmem()],
        out_specs=_vmem(),
    )(x, rand, w_slab, b_slab)


def init_params(key):
    """Deterministic init matching the nn.Linear shapes, packed into two slabs.

    * w_slab: (448,128) bf16 — all matmul weights, lane-padded to 128 and
      row-stacked at (16,128)-tile-aligned offsets.
    * b_slab: (8,128) f32 — all biases plus the spiking layer-2 weight row
      (used on the VPU, so kept in f32).
    """
    def linear(k, fan_in, fan_out):
        kw, kb = jax.random.split(k)
        limit = (6.0 / (fan_in + fan_out)) ** 0.5          # xavier-uniform-like
        w = jax.random.uniform(kw, (fan_in, fan_out), jnp.float32, -limit, limit)
        bb = 1.0 / (fan_in ** 0.5)
        b = jax.random.uniform(kb, (1, fan_out), jnp.float32, -bb, bb)
        return w, b

    keys = jax.random.split(key, 6)
    w1, b1 = linear(keys[0], INPUT_DIM, SPIKE_HIDDEN)      # (32,100), (1,100)
    w2, b2 = linear(keys[1], SPIKE_HIDDEN, OUTPUT_DIM)     # (100,1),  (1,1)
    ow1, ob1 = linear(keys[2], INPUT_DIM, HIDDEN_L1)
    ow2, ob2 = linear(keys[3], HIDDEN_L1, HIDDEN_L2)
    ow3, ob3 = linear(keys[4], HIDDEN_L2, HIDDEN_L3)
    ow4, ob4 = linear(keys[5], HIDDEN_L3, OUTPUT_DIM)

    def pad_to(a, rows, lanes=SPIKE_HIDDEN_PAD):
        return jnp.pad(a, ((0, rows - a.shape[0]), (0, lanes - a.shape[1])))

    w_slab = jnp.concatenate([
        pad_to(w1, 32), pad_to(ow1, 32), pad_to(ow2, 128),
        pad_to(ow3, 128), pad_to(ow4, 128),
    ], axis=0).astype(MXU_DTYPE)                            # (448,128) bf16
    assert w_slab.shape == (W_SLAB_ROWS, SPIKE_HIDDEN_PAD)

    b_slab = jnp.concatenate([
        pad_to(b1, 1), pad_to(w2.T, 1), pad_to(b2, 1),
        pad_to(ob1, 1), pad_to(ob2, 1), pad_to(ob3, 1), pad_to(ob4, 1),
        jnp.zeros((1, SPIKE_HIDDEN_PAD), jnp.float32),
    ], axis=0)                                              # (8,128) f32
    return {"w_slab": w_slab, "b_slab": b_slab}


@jax.jit
def spiking_neural_network_forward(x, params, rng_key):
    B = x.shape[0]
    # Random activation scalings for all time steps, generated up front so the
    # kernel hoists the layer-1 matmul across time.
    rand = jax.random.uniform(rng_key, (N_TIME_STEPS * B, INPUT_DIM),
                              dtype=jnp.float32)

    packed = snn_fused_call(x, rand, params["w_slab"], params["b_slab"])  # (B,128)
    mlp_out = packed[:, 0:OUTPUT_DIM]                 # output_conversion(x), (B,1)
    spike_bt = packed[:, 1:1 + N_TIME_STEPS]          # delayed layer-2 states, (B,T)

    # forward(): out = output_conversion(x[begin_eval:])
    out = mlp_out[BEGIN_EVAL:]
    # Delayed layer-2 inner states per time step (what forward_through_time
    # appends to `out` before discarding it) -> (T, B, 1).
    spike_states = jnp.transpose(spike_bt)[:, :, None]
    return out, spike_states


if __name__ == "__main__":
    key = jax.random.PRNGKey(0)
    kx, kp, kr = jax.random.split(key, 3)

    B = 8
    x = jax.random.normal(kx, (B, INPUT_DIM), dtype=jnp.float32)
    params = init_params(kp)

    out, spike_states = spiking_neural_network_forward(x, params, kr)
    jax.block_until_ready((out, spike_states))

    assert out.shape == (B - BEGIN_EVAL, OUTPUT_DIM)
    assert spike_states.shape == (N_TIME_STEPS, B, OUTPUT_DIM)
    assert bool(jnp.all(jnp.isfinite(out)))
    assert bool(jnp.all(jnp.isfinite(spike_states)))
    print("KERNEL_OK")
</pallas_src>

<mosaic_0001>
module attributes {stable_mosaic.version = 11 : i64} {
  func.func @_snn_fused_kernel(%arg0: memref<8x32xf32, #tpu.memory_space<vmem>>, %arg1: memref<64x32xf32, #tpu.memory_space<vmem>>, %arg2: memref<448x128xbf16, #tpu.memory_space<vmem>>, %arg3: memref<8x128xf32, #tpu.memory_space<vmem>>, %arg4: memref<8x128xf32, #tpu.memory_space<vmem>>) attributes {dimension_semantics = [], scalar_prefetch = 0 : i64, scratch_operands = 0 : i64, tpu.core_type = #tpu.core_type<tc>} {
    %c0 = arith.constant 0 : index
    %c0_0 = arith.constant 0 : index
    %0 = vector.load %arg0[%c0, %c0_0] : memref<8x32xf32, #tpu.memory_space<vmem>>, vector<8x32xf32>
    %c0_1 = arith.constant 0 : index
    %c0_2 = arith.constant 0 : index
    %1 = vector.load %arg1[%c0_1, %c0_2] : memref<64x32xf32, #tpu.memory_space<vmem>>, vector<64x32xf32>
    %2 = tpu.concatenate %0, %0, %0, %0, %0, %0, %0, %0 in 0 : vector<8x32xf32>, vector<8x32xf32>, vector<8x32xf32>, vector<8x32xf32>, vector<8x32xf32>, vector<8x32xf32>, vector<8x32xf32>, vector<8x32xf32> -> vector<64x32xf32>
    %3 = arith.mulf %1, %2 : vector<64x32xf32>
    %c0_3 = arith.constant 0 : index
    %c0_4 = arith.constant 0 : index
    %4 = vector.load %arg2[%c0_3, %c0_4] : memref<448x128xbf16, #tpu.memory_space<vmem>>, vector<32x128xbf16>
    %c0_5 = arith.constant 0 : index
    %c0_6 = arith.constant 0 : index
    %5 = vector.load %arg3[%c0_5, %c0_6] : memref<8x128xf32, #tpu.memory_space<vmem>>, vector<1x128xf32>
    %6 = arith.truncf %3 : vector<64x32xf32> to vector<64x32xbf16>
    %cst = arith.constant dense<0.000000e+00> : vector<64x128xf32>
    %7 = tpu.matmul %6, %4, %cst {dimension_numbers = #tpu.dot_dimension_numbers<[1], [0], [0], [1], [0, 0, 1, 1], [], []>} : vector<64x32xbf16>, vector<32x128xbf16>, vector<64x128xf32> -> vector<64x128xf32>
    %8 = vector.broadcast %5 : vector<1x128xf32> to vector<64x128xf32>
    %9 = arith.addf %7, %8 : vector<64x128xf32>
    %10 = vector.shape_cast %9 : vector<64x128xf32> to vector<8x8x128xf32>
    %cst_7 = arith.constant 0.000000e+00 : f32
    %11 = vector.broadcast %cst_7 : f32 to vector<8x128xf32>
    %cst_8 = arith.constant 0.000000e+00 : f32
    %12 = vector.broadcast %cst_8 : f32 to vector<8x128xf32>
    %13 = vector.extract_strided_slice %10 {offsets = [0, 0, 0], sizes = [1, 8, 128], strides = [1, 1, 1]} : vector<8x8x128xf32> to vector<1x8x128xf32>
    %14 = vector.shape_cast %13 : vector<1x8x128xf32> to vector<8x128xf32>
    %cst_9 = arith.constant 0.899999976 : f32
    %15 = vector.broadcast %cst_9 : f32 to vector<8x128xf32>
    %16 = arith.mulf %11, %15 : vector<8x128xf32>
    %17 = arith.addf %14, %16 : vector<8x128xf32>
    %cst_10 = arith.constant 1.000000e+00 : f32
    %18 = vector.broadcast %cst_10 : f32 to vector<8x128xf32>
    %19 = arith.subf %17, %18 : vector<8x128xf32>
    %cst_11 = arith.constant 0.000000e+00 : f32
    %20 = vector.broadcast %cst_11 : f32 to vector<8x128xf32>
    %21 = arith.maximumf %19, %20 : vector<8x128xf32>
    %cst_12 = arith.constant 0.000000e+00 : f32
    %22 = vector.broadcast %cst_12 : f32 to vector<8x128xf32>
    %23 = arith.cmpf ogt, %21, %22 : vector<8x128xf32>
    %cst_13 = arith.constant -5.000000e-01 : f32
    %24 = vector.broadcast %cst_13 : f32 to vector<8x128xf32>
    %25 = arith.mulf %17, %24 : vector<8x128xf32>
    %26 = arith.select %23, %25, %17 : vector<8x128xi1>, vector<8x128xf32>
    %27 = vector.extract_strided_slice %10 {offsets = [1, 0, 0], sizes = [1, 8, 128], strides = [1, 1, 1]} : vector<8x8x128xf32> to vector<1x8x128xf32>
    %28 = vector.shape_cast %27 : vector<1x8x128xf32> to vector<8x128xf32>
    %cst_14 = arith.constant 0.899999976 : f32
    %29 = vector.broadcast %cst_14 : f32 to vector<8x128xf32>
    %30 = arith.mulf %26, %29 : vector<8x128xf32>
    %31 = arith.addf %28, %30 : vector<8x128xf32>
    %cst_15 = arith.constant 1.000000e+00 : f32
    %32 = vector.broadcast %cst_15 : f32 to vector<8x128xf32>
    %33 = arith.subf %31, %32 : vector<8x128xf32>
    %cst_16 = arith.constant 0.000000e+00 : f32
    %34 = vector.broadcast %cst_16 : f32 to vector<8x128xf32>
    %35 = arith.maximumf %33, %34 : vector<8x128xf32>
    %cst_17 = arith.constant 0.000000e+00 : f32
    %36 = vector.broadcast %cst_17 : f32 to vector<8x128xf32>
    %37 = arith.cmpf ogt, %35, %36 : vector<8x128xf32>
    %cst_18 = arith.constant -5.000000e-01 : f32
    %38 = vector.broadcast %cst_18 : f32 to vector<8x128xf32>
    %39 = arith.mulf %31, %38 : vector<8x128xf32>
    %40 = arith.select %37, %39, %31 : vector<8x128xi1>, vector<8x128xf32>
    %41 = vector.extract_strided_slice %10 {offsets = [2, 0, 0], sizes = [1, 8, 128], strides = [1, 1, 1]} : vector<8x8x128xf32> to vector<1x8x128xf32>
    %42 = vector.shape_cast %41 : vector<1x8x128xf32> to vector<8x128xf32>
    %cst_19 = arith.constant 0.899999976 : f32
    %43 = vector.broadcast %cst_19 : f32 to vector<8x128xf32>
    %44 = arith.mulf %40, %43 : vector<8x128xf32>
    %45 = arith.addf %42, %44 : vector<8x128xf32>
    %cst_20 = arith.constant 1.000000e+00 : f32
    %46 = vector.broadcast %cst_20 : f32 to vector<8x128xf32>
    %47 = arith.subf %45, %46 : vector<8x128xf32>
    %cst_21 = arith.constant 0.000000e+00 : f32
    %48 = vector.broadcast %cst_21 : f32 to vector<8x128xf32>
    %49 = arith.maximumf %47, %48 : vector<8x128xf32>
    %cst_22 = arith.constant 0.000000e+00 : f32
    %50 = vector.broadcast %cst_22 : f32 to vector<8x128xf32>
    %51 = arith.cmpf ogt, %49, %50 : vector<8x128xf32>
    %cst_23 = arith.constant -5.000000e-01 : f32
    %52 = vector.broadcast %cst_23 : f32 to vector<8x128xf32>
    %53 = arith.mulf %45, %52 : vector<8x128xf32>
    %54 = arith.select %51, %53, %45 : vector<8x128xi1>, vector<8x128xf32>
    %55 = vector.extract_strided_slice %10 {offsets = [3, 0, 0], sizes = [1, 8, 128], strides = [1, 1, 1]} : vector<8x8x128xf32> to vector<1x8x128xf32>
    %56 = vector.shape_cast %55 : vector<1x8x128xf32> to vector<8x128xf32>
    %cst_24 = arith.constant 0.899999976 : f32
    %57 = vector.broadcast %cst_24 : f32 to vector<8x128xf32>
    %58 = arith.mulf %54, %57 : vector<8x128xf32>
    %59 = arith.addf %56, %58 : vector<8x128xf32>
    %cst_25 = arith.constant 1.000000e+00 : f32
    %60 = vector.broadcast %cst_25 : f32 to vector<8x128xf32>
    %61 = arith.subf %59, %60 : vector<8x128xf32>
    %cst_26 = arith.constant 0.000000e+00 : f32
    %62 = vector.broadcast %cst_26 : f32 to vector<8x128xf32>
    %63 = arith.maximumf %61, %62 : vector<8x128xf32>
    %cst_27 = arith.constant 0.000000e+00 : f32
    %64 = vector.broadcast %cst_27 : f32 to vector<8x128xf32>
    %65 = arith.cmpf ogt, %63, %64 : vector<8x128xf32>
    %cst_28 = arith.constant -5.000000e-01 : f32
    %66 = vector.broadcast %cst_28 : f32 to vector<8x128xf32>
    %67 = arith.mulf %59, %66 : vector<8x128xf32>
    %68 = arith.select %65, %67, %59 : vector<8x128xi1>, vector<8x128xf32>
    %69 = vector.extract_strided_slice %10 {offsets = [4, 0, 0], sizes = [1, 8, 128], strides = [1, 1, 1]} : vector<8x8x128xf32> to vector<1x8x128xf32>
    %70 = vector.shape_cast %69 : vector<1x8x128xf32> to vector<8x128xf32>
    %cst_29 = arith.constant 0.899999976 : f32
    %71 = vector.broadcast %cst_29 : f32 to vector<8x128xf32>
    %72 = arith.mulf %68, %71 : vector<8x128xf32>
    %73 = arith.addf %70, %72 : vector<8x128xf32>
    %cst_30 = arith.constant 1.000000e+00 : f32
    %74 = vector.broadcast %cst_30 : f32 to vector<8x128xf32>
    %75 = arith.subf %73, %74 : vector<8x128xf32>
    %cst_31 = arith.constant 0.000000e+00 : f32
    %76 = vector.broadcast %cst_31 : f32 to vector<8x128xf32>
    %77 = arith.maximumf %75, %76 : vector<8x128xf32>
    %cst_32 = arith.constant 0.000000e+00 : f32
    %78 = vector.broadcast %cst_32 : f32 to vector<8x128xf32>
    %79 = arith.cmpf ogt, %77, %78 : vector<8x128xf32>
    %cst_33 = arith.constant -5.000000e-01 : f32
    %80 = vector.broadcast %cst_33 : f32 to vector<8x128xf32>
    %81 = arith.mulf %73, %80 : vector<8x128xf32>
    %82 = arith.select %79, %81, %73 : vector<8x128xi1>, vector<8x128xf32>
    %83 = vector.extract_strided_slice %10 {offsets = [5, 0, 0], sizes = [1, 8, 128], strides = [1, 1, 1]} : vector<8x8x128xf32> to vector<1x8x128xf32>
    %84 = vector.shape_cast %83 : vector<1x8x128xf32> to vector<8x128xf32>
    %cst_34 = arith.constant 0.899999976 : f32
    %85 = vector.broadcast %cst_34 : f32 to vector<8x128xf32>
    %86 = arith.mulf %82, %85 : vector<8x128xf32>
    %87 = arith.addf %84, %86 : vector<8x128xf32>
    %cst_35 = arith.constant 1.000000e+00 : f32
    %88 = vector.broadcast %cst_35 : f32 to vector<8x128xf32>
    %89 = arith.subf %87, %88 : vector<8x128xf32>
    %cst_36 = arith.constant 0.000000e+00 : f32
    %90 = vector.broadcast %cst_36 : f32 to vector<8x128xf32>
    %91 = arith.maximumf %89, %90 : vector<8x128xf32>
    %cst_37 = arith.constant 0.000000e+00 : f32
    %92 = vector.broadcast %cst_37 : f32 to vector<8x128xf32>
    %93 = arith.cmpf ogt, %91, %92 : vector<8x128xf32>
    %cst_38 = arith.constant -5.000000e-01 : f32
    %94 = vector.broadcast %cst_38 : f32 to vector<8x128xf32>
    %95 = arith.mulf %87, %94 : vector<8x128xf32>
    %96 = arith.select %93, %95, %87 : vector<8x128xi1>, vector<8x128xf32>
    %97 = vector.extract_strided_slice %10 {offsets = [6, 0, 0], sizes = [1, 8, 128], strides = [1, 1, 1]} : vector<8x8x128xf32> to vector<1x8x128xf32>
    %98 = vector.shape_cast %97 : vector<1x8x128xf32> to vector<8x128xf32>
    %cst_39 = arith.constant 0.899999976 : f32
    %99 = vector.broadcast %cst_39 : f32 to vector<8x128xf32>
    %100 = arith.mulf %96, %99 : vector<8x128xf32>
    %101 = arith.addf %98, %100 : vector<8x128xf32>
    %cst_40 = arith.constant 1.000000e+00 : f32
    %102 = vector.broadcast %cst_40 : f32 to vector<8x128xf32>
    %103 = arith.subf %101, %102 : vector<8x128xf32>
    %cst_41 = arith.constant 0.000000e+00 : f32
    %104 = vector.broadcast %cst_41 : f32 to vector<8x128xf32>
    %105 = arith.maximumf %103, %104 : vector<8x128xf32>
    %c1 = arith.constant 1 : index
    %c0_42 = arith.constant 0 : index
    %106 = vector.load %arg3[%c1, %c0_42] : memref<8x128xf32, #tpu.memory_space<vmem>>, vector<1x128xf32>
    %c2 = arith.constant 2 : index
    %c0_43 = arith.constant 0 : index
    %107 = vector.load %arg3[%c2, %c0_43] : memref<8x128xf32, #tpu.memory_space<vmem>>, vector<1x1xf32>
    %108 = tpu.concatenate %12, %21, %35, %49, %63, %77, %91, %105 in 0 : vector<8x128xf32>, vector<8x128xf32>, vector<8x128xf32>, vector<8x128xf32>, vector<8x128xf32>, vector<8x128xf32>, vector<8x128xf32>, vector<8x128xf32> -> vector<64x128xf32>
    %109 = vector.broadcast %106 : vector<1x128xf32> to vector<64x128xf32>
    %110 = arith.mulf %108, %109 : vector<64x128xf32>
    %cst_44 = arith.constant dense<0.000000e+00> : vector<64xf32>
    %111 = vector.multi_reduction <add>, %110, %cst_44 [1] : vector<64x128xf32> to vector<64xf32>
    %112 = vector.shape_cast %111 : vector<64xf32> to vector<64x1xf32>
    %113 = vector.broadcast %107 : vector<1x1xf32> to vector<64x1xf32>
    %114 = arith.addf %112, %113 : vector<64x1xf32>
    %115 = tpu.iota {dimensions = array<i32: 1>} : vector<8x128xi32>
    %cst_45 = arith.constant 0.000000e+00 : f32
    %116 = vector.broadcast %cst_45 : f32 to vector<8x128xf32>
    %cst_46 = arith.constant 0.000000e+00 : f32
    %117 = vector.broadcast %cst_46 : f32 to vector<8x1xf32>
    %118 = vector.extract_strided_slice %114 {offsets = [0, 0], sizes = [8, 1], strides = [1, 1]} : vector<64x1xf32> to vector<8x1xf32>
    %cst_47 = arith.constant 0.899999976 : f32
    %119 = vector.broadcast %cst_47 : f32 to vector<8x1xf32>
    %120 = arith.mulf %117, %119 : vector<8x1xf32>
    %121 = arith.addf %118, %120 : vector<8x1xf32>
    %cst_48 = arith.constant 1.000000e+00 : f32
    %122 = vector.broadcast %cst_48 : f32 to vector<8x1xf32>
    %123 = arith.subf %121, %122 : vector<8x1xf32>
    %cst_49 = arith.constant 0.000000e+00 : f32
    %124 = vector.broadcast %cst_49 : f32 to vector<8x1xf32>
    %125 = arith.maximumf %123, %124 : vector<8x1xf32>
    %cst_50 = arith.constant 0.000000e+00 : f32
    %126 = vector.broadcast %cst_50 : f32 to vector<8x1xf32>
    %127 = arith.cmpf ogt, %125, %126 : vector<8x1xf32>
    %cst_51 = arith.constant -5.000000e-01 : f32
    %128 = vector.broadcast %cst_51 : f32 to vector<8x1xf32>
    %129 = arith.mulf %121, %128 : vector<8x1xf32>
    %130 = arith.select %127, %129, %121 : vector<8x1xi1>, vector<8x1xf32>
    %c2_i32 = arith.constant 2 : i32
    %131 = vector.broadcast %c2_i32 : i32 to vector<8x128xi32>
    %132 = arith.cmpi eq, %115, %131 : vector<8x128xi32>
    %cst_52 = arith.constant 0.000000e+00 : f32
    %133 = vector.shape_cast %130 : vector<8x1xf32> to vector<8x1xf32>
    %134 = vector.broadcast %133 : vector<8x1xf32> to vector<8x128xf32>
    %135 = vector.broadcast %cst_52 : f32 to vector<8x128xf32>
    %136 = arith.select %132, %134, %135 : vector<8x128xi1>, vector<8x128xf32>
    %137 = arith.addf %116, %136 : vector<8x128xf32>
    %138 = vector.extract_strided_slice %114 {offsets = [8, 0], sizes = [8, 1], strides = [1, 1]} : vector<64x1xf32> to vector<8x1xf32>
    %cst_53 = arith.constant 0.899999976 : f32
    %139 = vector.broadcast %cst_53 : f32 to vector<8x1xf32>
    %140 = arith.mulf %130, %139 : vector<8x1xf32>
    %141 = arith.addf %138, %140 : vector<8x1xf32>
    %cst_54 = arith.constant 1.000000e+00 : f32
    %142 = vector.broadcast %cst_54 : f32 to vector<8x1xf32>
    %143 = arith.subf %141, %142 : vector<8x1xf32>
    %cst_55 = arith.constant 0.000000e+00 : f32
    %144 = vector.broadcast %cst_55 : f32 to vector<8x1xf32>
    %145 = arith.maximumf %143, %144 : vector<8x1xf32>
    %cst_56 = arith.constant 0.000000e+00 : f32
    %146 = vector.broadcast %cst_56 : f32 to vector<8x1xf32>
    %147 = arith.cmpf ogt, %145, %146 : vector<8x1xf32>
    %cst_57 = arith.constant -5.000000e-01 : f32
    %148 = vector.broadcast %cst_57 : f32 to vector<8x1xf32>
    %149 = arith.mulf %141, %148 : vector<8x1xf32>
    %150 = arith.select %147, %149, %141 : vector<8x1xi1>, vector<8x1xf32>
    %c3_i32 = arith.constant 3 : i32
    %151 = vector.broadcast %c3_i32 : i32 to vector<8x128xi32>
    %152 = arith.cmpi eq, %115, %151 : vector<8x128xi32>
    %cst_58 = arith.constant 0.000000e+00 : f32
    %153 = vector.shape_cast %150 : vector<8x1xf32> to vector<8x1xf32>
    %154 = vector.broadcast %153 : vector<8x1xf32> to vector<8x128xf32>
    %155 = vector.broadcast %cst_58 : f32 to vector<8x128xf32>
    %156 = arith.select %152, %154, %155 : vector<8x128xi1>, vector<8x128xf32>
    %157 = arith.addf %137, %156 : vector<8x128xf32>
    %158 = vector.extract_strided_slice %114 {offsets = [16, 0], sizes = [8, 1], strides = [1, 1]} : vector<64x1xf32> to vector<8x1xf32>
    %cst_59 = arith.constant 0.899999976 : f32
    %159 = vector.broadcast %cst_59 : f32 to vector<8x1xf32>
    %160 = arith.mulf %150, %159 : vector<8x1xf32>
    %161 = arith.addf %158, %160 : vector<8x1xf32>
    %cst_60 = arith.constant 1.000000e+00 : f32
    %162 = vector.broadcast %cst_60 : f32 to vector<8x1xf32>
    %163 = arith.subf %161, %162 : vector<8x1xf32>
    %cst_61 = arith.constant 0.000000e+00 : f32
    %164 = vector.broadcast %cst_61 : f32 to vector<8x1xf32>
    %165 = arith.maximumf %163, %164 : vector<8x1xf32>
    %cst_62 = arith.constant 0.000000e+00 : f32
    %166 = vector.broadcast %cst_62 : f32 to vector<8x1xf32>
    %167 = arith.cmpf ogt, %165, %166 : vector<8x1xf32>
    %cst_63 = arith.constant -5.000000e-01 : f32
    %168 = vector.broadcast %cst_63 : f32 to vector<8x1xf32>
    %169 = arith.mulf %161, %168 : vector<8x1xf32>
    %170 = arith.select %167, %169, %161 : vector<8x1xi1>, vector<8x1xf32>
    %c4_i32 = arith.constant 4 : i32
    %171 = vector.broadcast %c4_i32 : i32 to vector<8x128xi32>
    %172 = arith.cmpi eq, %115, %171 : vector<8x128xi32>
    %cst_64 = arith.constant 0.000000e+00 : f32
    %173 = vector.shape_cast %170 : vector<8x1xf32> to vector<8x1xf32>
    %174 = vector.broadcast %173 : vector<8x1xf32> to vector<8x128xf32>
    %175 = vector.broadcast %cst_64 : f32 to vector<8x128xf32>
    %176 = arith.select %172, %174, %175 : vector<8x128xi1>, vector<8x128xf32>
    %177 = arith.addf %157, %176 : vector<8x128xf32>
    %178 = vector.extract_strided_slice %114 {offsets = [24, 0], sizes = [8, 1], strides = [1, 1]} : vector<64x1xf32> to vector<8x1xf32>
    %cst_65 = arith.constant 0.899999976 : f32
    %179 = vector.broadcast %cst_65 : f32 to vector<8x1xf32>
    %180 = arith.mulf %170, %179 : vector<8x1xf32>
    %181 = arith.addf %178, %180 : vector<8x1xf32>
    %cst_66 = arith.constant 1.000000e+00 : f32
    %182 = vector.broadcast %cst_66 : f32 to vector<8x1xf32>
    %183 = arith.subf %181, %182 : vector<8x1xf32>
    %cst_67 = arith.constant 0.000000e+00 : f32
    %184 = vector.broadcast %cst_67 : f32 to vector<8x1xf32>
    %185 = arith.maximumf %183, %184 : vector<8x1xf32>
    %cst_68 = arith.constant 0.000000e+00 : f32
    %186 = vector.broadcast %cst_68 : f32 to vector<8x1xf32>
    %187 = arith.cmpf ogt, %185, %186 : vector<8x1xf32>
    %cst_69 = arith.constant -5.000000e-01 : f32
    %188 = vector.broadcast %cst_69 : f32 to vector<8x1xf32>
    %189 = arith.mulf %181, %188 : vector<8x1xf32>
    %190 = arith.select %187, %189, %181 : vector<8x1xi1>, vector<8x1xf32>
    %c5_i32 = arith.constant 5 : i32
    %191 = vector.broadcast %c5_i32 : i32 to vector<8x128xi32>
    %192 = arith.cmpi eq, %115, %191 : vector<8x128xi32>
    %cst_70 = arith.constant 0.000000e+00 : f32
    %193 = vector.shape_cast %190 : vector<8x1xf32> to vector<8x1xf32>
    %194 = vector.broadcast %193 : vector<8x1xf32> to vector<8x128xf32>
    %195 = vector.broadcast %cst_70 : f32 to vector<8x128xf32>
    %196 = arith.select %192, %194, %195 : vector<8x128xi1>, vector<8x128xf32>
    %197 = arith.addf %177, %196 : vector<8x128xf32>
    %198 = vector.extract_strided_slice %114 {offsets = [32, 0], sizes = [8, 1], strides = [1, 1]} : vector<64x1xf32> to vector<8x1xf32>
    %cst_71 = arith.constant 0.899999976 : f32
    %199 = vector.broadcast %cst_71 : f32 to vector<8x1xf32>
    %200 = arith.mulf %190, %199 : vector<8x1xf32>
    %201 = arith.addf %198, %200 : vector<8x1xf32>
    %cst_72 = arith.constant 1.000000e+00 : f32
    %202 = vector.broadcast %cst_72 : f32 to vector<8x1xf32>
    %203 = arith.subf %201, %202 : vector<8x1xf32>
    %cst_73 = arith.constant 0.000000e+00 : f32
    %204 = vector.broadcast %cst_73 : f32 to vector<8x1xf32>
    %205 = arith.maximumf %203, %204 : vector<8x1xf32>
    %cst_74 = arith.constant 0.000000e+00 : f32
    %206 = vector.broadcast %cst_74 : f32 to vector<8x1xf32>
    %207 = arith.cmpf ogt, %205, %206 : vector<8x1xf32>
    %cst_75 = arith.constant -5.000000e-01 : f32
    %208 = vector.broadcast %cst_75 : f32 to vector<8x1xf32>
    %209 = arith.mulf %201, %208 : vector<8x1xf32>
    %210 = arith.select %207, %209, %201 : vector<8x1xi1>, vector<8x1xf32>
    %c6_i32 = arith.constant 6 : i32
    %211 = vector.broadcast %c6_i32 : i32 to vector<8x128xi32>
    %212 = arith.cmpi eq, %115, %211 : vector<8x128xi32>
    %cst_76 = arith.constant 0.000000e+00 : f32
    %213 = vector.shape_cast %210 : vector<8x1xf32> to vector<8x1xf32>
    %214 = vector.broadcast %213 : vector<8x1xf32> to vector<8x128xf32>
    %215 = vector.broadcast %cst_76 : f32 to vector<8x128xf32>
    %216 = arith.select %212, %214, %215 : vector<8x128xi1>, vector<8x128xf32>
    %217 = arith.addf %197, %216 : vector<8x128xf32>
    %218 = vector.extract_strided_slice %114 {offsets = [40, 0], sizes = [8, 1], strides = [1, 1]} : vector<64x1xf32> to vector<8x1xf32>
    %cst_77 = arith.constant 0.899999976 : f32
    %219 = vector.broadcast %cst_77 : f32 to vector<8x1xf32>
    %220 = arith.mulf %210, %219 : vector<8x1xf32>
    %221 = arith.addf %218, %220 : vector<8x1xf32>
    %cst_78 = arith.constant 1.000000e+00 : f32
    %222 = vector.broadcast %cst_78 : f32 to vector<8x1xf32>
    %223 = arith.subf %221, %222 : vector<8x1xf32>
    %cst_79 = arith.constant 0.000000e+00 : f32
    %224 = vector.broadcast %cst_79 : f32 to vector<8x1xf32>
    %225 = arith.maximumf %223, %224 : vector<8x1xf32>
    %cst_80 = arith.constant 0.000000e+00 : f32
    %226 = vector.broadcast %cst_80 : f32 to vector<8x1xf32>
    %227 = arith.cmpf ogt, %225, %226 : vector<8x1xf32>
    %cst_81 = arith.constant -5.000000e-01 : f32
    %228 = vector.broadcast %cst_81 : f32 to vector<8x1xf32>
    %229 = arith.mulf %221, %228 : vector<8x1xf32>
    %230 = arith.select %227, %229, %221 : vector<8x1xi1>, vector<8x1xf32>
    %c7_i32 = arith.constant 7 : i32
    %231 = vector.broadcast %c7_i32 : i32 to vector<8x128xi32>
    %232 = arith.cmpi eq, %115, %231 : vector<8x128xi32>
    %cst_82 = arith.constant 0.000000e+00 : f32
    %233 = vector.shape_cast %230 : vector<8x1xf32> to vector<8x1xf32>
    %234 = vector.broadcast %233 : vector<8x1xf32> to vector<8x128xf32>
    %235 = vector.broadcast %cst_82 : f32 to vector<8x128xf32>
    %236 = arith.select %232, %234, %235 : vector<8x128xi1>, vector<8x128xf32>
    %237 = arith.addf %217, %236 : vector<8x128xf32>
    %238 = vector.extract_strided_slice %114 {offsets = [48, 0], sizes = [8, 1], strides = [1, 1]} : vector<64x1xf32> to vector<8x1xf32>
    %cst_83 = arith.constant 0.899999976 : f32
    %239 = vector.broadcast %cst_83 : f32 to vector<8x1xf32>
    %240 = arith.mulf %230, %239 : vector<8x1xf32>
    %241 = arith.addf %238, %240 : vector<8x1xf32>
    %cst_84 = arith.constant 1.000000e+00 : f32
    %242 = vector.broadcast %cst_84 : f32 to vector<8x1xf32>
    %243 = arith.subf %241, %242 : vector<8x1xf32>
    %cst_85 = arith.constant 0.000000e+00 : f32
    %244 = vector.broadcast %cst_85 : f32 to vector<8x1xf32>
    %245 = arith.maximumf %243, %244 : vector<8x1xf32>
    %cst_86 = arith.constant 0.000000e+00 : f32
    %246 = vector.broadcast %cst_86 : f32 to vector<8x1xf32>
    %247 = arith.cmpf ogt, %245, %246 : vector<8x1xf32>
    %cst_87 = arith.constant -5.000000e-01 : f32
    %248 = vector.broadcast %cst_87 : f32 to vector<8x1xf32>
    %249 = arith.mulf %241, %248 : vector<8x1xf32>
    %250 = arith.select %247, %249, %241 : vector<8x1xi1>, vector<8x1xf32>
    %c8_i32 = arith.constant 8 : i32
    %251 = vector.broadcast %c8_i32 : i32 to vector<8x128xi32>
    %252 = arith.cmpi eq, %115, %251 : vector<8x128xi32>
    %cst_88 = arith.constant 0.000000e+00 : f32
    %253 = vector.shape_cast %250 : vector<8x1xf32> to vector<8x1xf32>
    %254 = vector.broadcast %253 : vector<8x1xf32> to vector<8x128xf32>
    %255 = vector.broadcast %cst_88 : f32 to vector<8x128xf32>
    %256 = arith.select %252, %254, %255 : vector<8x128xi1>, vector<8x128xf32>
    %257 = arith.addf %237, %256 : vector<8x128xf32>
    %c32 = arith.constant 32 : index
    %c0_89 = arith.constant 0 : index
    %258 = vector.load %arg2[%c32, %c0_89] : memref<448x128xbf16, #tpu.memory_space<vmem>>, vector<32x128xbf16>
    %c64 = arith.constant 64 : index
    %c0_90 = arith.constant 0 : index
    %259 = vector.load %arg2[%c64, %c0_90] : memref<448x128xbf16, #tpu.memory_space<vmem>>, vector<128x128xbf16>
    %c192 = arith.constant 192 : index
    %c0_91 = arith.constant 0 : index
    %260 = vector.load %arg2[%c192, %c0_91] : memref<448x128xbf16, #tpu.memory_space<vmem>>, vector<128x128xbf16>
    %c320 = arith.constant 320 : index
    %c0_92 = arith.constant 0 : index
    %261 = vector.load %arg2[%c320, %c0_92] : memref<448x128xbf16, #tpu.memory_space<vmem>>, vector<128x128xbf16>
    %c3 = arith.constant 3 : index
    %c0_93 = arith.constant 0 : index
    %262 = vector.load %arg3[%c3, %c0_93] : memref<8x128xf32, #tpu.memory_space<vmem>>, vector<1x128xf32>
    %c4 = arith.constant 4 : index
    %c0_94 = arith.constant 0 : index
    %263 = vector.load %arg3[%c4, %c0_94] : memref<8x128xf32, #tpu.memory_space<vmem>>, vector<1x128xf32>
    %c5 = arith.constant 5 : index
    %c0_95 = arith.constant 0 : index
    %264 = vector.load %arg3[%c5, %c0_95] : memref<8x128xf32, #tpu.memory_space<vmem>>, vector<1x128xf32>
    %c6 = arith.constant 6 : index
    %c0_96 = arith.constant 0 : index
    %265 = vector.load %arg3[%c6, %c0_96] : memref<8x128xf32, #tpu.memory_space<vmem>>, vector<1x128xf32>
    %266 = arith.truncf %0 : vector<8x32xf32> to vector<8x32xbf16>
    %cst_97 = arith.constant dense<0.000000e+00> : vector<8x128xf32>
    %267 = tpu.matmul %266, %258, %cst_97 {dimension_numbers = #tpu.dot_dimension_numbers<[1], [0], [0], [1], [0, 0, 1, 1], [], []>} : vector<8x32xbf16>, vector<32x128xbf16>, vector<8x128xf32> -> vector<8x128xf32>
    %268 = vector.broadcast %262 : vector<1x128xf32> to vector<8x128xf32>
    %269 = arith.addf %267, %268 : vector<8x128xf32>
    %cst_98 = arith.constant 0.000000e+00 : f32
    %270 = vector.broadcast %cst_98 : f32 to vector<8x128xf32>
    %271 = arith.maximumf %269, %270 : vector<8x128xf32>
    %272 = arith.truncf %271 : vector<8x128xf32> to vector<8x128xbf16>
    %cst_99 = arith.constant dense<0.000000e+00> : vector<8x128xf32>
    %273 = tpu.matmul %272, %259, %cst_99 {dimension_numbers = #tpu.dot_dimension_numbers<[1], [0], [0], [1], [0, 0, 1, 1], [], []>} : vector<8x128xbf16>, vector<128x128xbf16>, vector<8x128xf32> -> vector<8x128xf32>
    %274 = vector.broadcast %263 : vector<1x128xf32> to vector<8x128xf32>
    %275 = arith.addf %273, %274 : vector<8x128xf32>
    %cst_100 = arith.constant 0.000000e+00 : f32
    %276 = vector.broadcast %cst_100 : f32 to vector<8x128xf32>
    %277 = arith.maximumf %275, %276 : vector<8x128xf32>
    %278 = arith.truncf %277 : vector<8x128xf32> to vector<8x128xbf16>
    %cst_101 = arith.constant dense<0.000000e+00> : vector<8x128xf32>
    %279 = tpu.matmul %278, %260, %cst_101 {dimension_numbers = #tpu.dot_dimension_numbers<[1], [0], [0], [1], [0, 0, 1, 1], [], []>} : vector<8x128xbf16>, vector<128x128xbf16>, vector<8x128xf32> -> vector<8x128xf32>
    %280 = vector.broadcast %264 : vector<1x128xf32> to vector<8x128xf32>
    %281 = arith.addf %279, %280 : vector<8x128xf32>
    %cst_102 = arith.constant 0.000000e+00 : f32
    %282 = vector.broadcast %cst_102 : f32 to vector<8x128xf32>
    %283 = arith.maximumf %281, %282 : vector<8x128xf32>
    %284 = arith.truncf %283 : vector<8x128xf32> to vector<8x128xbf16>
    %cst_103 = arith.constant dense<0.000000e+00> : vector<8x128xf32>
    %285 = tpu.matmul %284, %261, %cst_103 {dimension_numbers = #tpu.dot_dimension_numbers<[1], [0], [0], [1], [0, 0, 1, 1], [], []>} : vector<8x128xbf16>, vector<128x128xbf16>, vector<8x128xf32> -> vector<8x128xf32>
    %286 = vector.broadcast %265 : vector<1x128xf32> to vector<8x128xf32>
    %287 = arith.addf %285, %286 : vector<8x128xf32>
    %288 = arith.addf %287, %257 : vector<8x128xf32>
    %c0_104 = arith.constant 0 : index
    %c0_105 = arith.constant 0 : index
    %289 = vector.load %arg4[%c0_104, %c0_105] : memref<8x128xf32, #tpu.memory_space<vmem>>, vector<8x128xf32>
    tpu.vector_store %arg4[%c0_104, %c0_105], %288 {strides = array<i32>} : memref<8x128xf32, #tpu.memory_space<vmem>>, vector<8x128xf32>,
    return
  }
}

</mosaic_0001>

<bundles_post_ra>
// kernel: spiking_neural_network_forward.1
= control target key start
LH: loop header
LB: loop body
LE: loop exit
PB: predicated region body
PF: predicated region fallthrough
CT: control target
= control target key end

     0   :  { %9 = vsyncpa [#allocation3], 0  ;;  %s964_s15 = smov [#allocation2]   ;;  %s1114_s0 = inlined_call_operand.vmem [shape: f32[8,32], index: 0, kind: input, shape index: {}]   ;;  %s1115_s1 = inlined_call_operand.vmem [shape: f32[64,32], index: 1, kind: input, shape index: {}]   ;;  %s1116_s2 = inlined_call_operand.hbm [shape: bf16[448,128], index: 2, kind: input, shape index: {}]   ;;  %s1117_s3 = inlined_call_operand.vmem [shape: f32[8,128], index: 3, kind: input, shape index: {}]   ;;  %s1118_s4 = inlined_call_operand.vmem [shape: f32[8,128], index: 4, kind: output, shape index: {}]  }
   0x1   :  { %s19_s16 = sshll.u32 %s964_s15, 4  ;;  %s20_s16 = int_to_ptr.vmem [resolvable:$true] %s19_s16 }
   0x2   :  { %s950_s17 = scalar_lea.vmem %s20_s16, 3584  ;;  %p955_p1 = scmp.lt.s32.totalorder %s20_s16, %s20_s16 }
   0x3   :  { %p951_p0 = scmp.ne.s32.totalorder %s20_s16, %s950_s17  ;;  %p956_p2 = scmp.lt.s32.totalorder %s950_s17, %s950_s17 }
   0x5   :  { %p957_p3 = por %p956_p2, %p955_p1 }
   0x7   :  { %p958_p4 = pnand %p957_p3, %p951_p0 }
   0x9   :  { %961 = shalt.err (!%p958_p4)
}
   0xa   :  { %s965_s18 = smov 64   ;;  %s966_s19 = smov 4  }
   0xb   :  { %25 = dma.hbm_to_vmem [thread:$0]  %s1116_s2, 3584, %s20_s16, [#allocation3], %s965_s18, %s965_s18, %s966_s19  }
   0xc   :  { %962 = dma.done.wait [#allocation3], 3584  }
   0xd   :  { %963 = vsyncadd [#allocation3], 4294963712  ;;  %v967_v0 = vmov 0.0   ;;  %vm968_vm0 = vmmov 0   ;;  %v914_v1 = vld [vmem:[#allocation2 + $0x8] sm:$0xff]   ;;  %v915_v2 = vld [vmem:[#allocation2] sm:$0xff]  }
   0xe   :  { %846 = vmatprep.subr.bf16.mxu0 %v967_v0  ;;  %862 = vmatprep.mubr.msk.bf16.mxu0 %vm968_vm0, %v967_v0  ;;  %v32_v3 = vld [vmem:[%s1114_s0] sm:$0xff]  ;;  %v34_v5 = vld [vmem:[%s1115_s1 + $0x8] sm:$0xff]  ;;  %v35_v8 = vld [vmem:[%s1115_s1 + $0x10] sm:$0xff]  ;;  %vm74_vm1 = vcmask 261120  }
   0xf   :  { %826 = vmatprep.subr.bf16.mxu1 %v914_v1  ;;  %v33_v4 = vld [vmem:[%s1115_s1] sm:$0xff]  ;;  %v42_v7 = vmul.f32 %v34_v5, %v32_v3  ;;  %v36_v9 = vld [vmem:[%s1115_s1 + $0x18] sm:$0xff]  ;;  %v43_v10 = vmul.f32 %v35_v8, %v32_v3  ;;  %v38_v15 = vld [vmem:[%s1115_s1 + $0x28] sm:$0xff]  ;;  %v388_v28 = vpack.c.bf16 %v32_v3, %v32_v3 }
  0x10   :  { %827 = vmatpush3.bf16.msra.mxu1 %v914_v1  ;;  %v41_v6 = vmul.f32 %v33_v4, %v32_v3  ;;  %v44_v11 = vmul.f32 %v36_v9, %v32_v3  ;;  %v37_v12 = vld [vmem:[%s1115_s1 + $0x20] sm:$0xff]  ;;  %v916_v14 = vld [vmem:[#allocation2 + $0x18] sm:$0xff]   ;;  %v39_v17 = vld [vmem:[%s1115_s1 + $0x30] sm:$0xff]  ;;  %v46_v19 = vmul.f32 %v38_v15, %v32_v3 }
  0x11   :  { %828 = vmatprep.subr.bf16.mxu1 %v915_v2  ;;  %v45_v16 = vmul.f32 %v37_v12, %v32_v3  ;;  %v40_v20 = vld [vmem:[%s1115_s1 + $0x38] sm:$0xff]  ;;  %v919_v23 = vld [vmem:[#allocation2 + $0x50] sm:$0xff]   ;;  %v47_v25 = vmul.f32 %v39_v17, %v32_v3  ;;  %v920_v29 = vld [vmem:[#allocation2 + $0x48] sm:$0xff]  }
  0x12   :  { %v54_v13 = vpack.c.bf16 %v42_v7, %v41_v6  ;;  %v55_v18 = vpack.c.bf16 %v44_v11, %v43_v10  ;;  %v918_v21 = vld [vmem:[#allocation2 + $0x58] sm:$0xff]   ;;  %v917_v24 = vld [vmem:[#allocation2 + $0x10] sm:$0xff]   ;;  %v48_v26 = vmul.f32 %v40_v20, %v32_v3  ;;  %v1045_v30 = vld [vmem:[%s1117_s3 + $0x1] ss:$0 sm:$0xff]  ;;  %v969_v7 = vmov 0  }
  0x13   :  { %v56_v22 = vpack.c.bf16 %v46_v19, %v45_v16  ;;  %847 = vmatpush3.bf16.msra.mxu0 %v918_v21  ;;  %v194_v31 = vmul.f32 0.0, %v1045_v30  ;;  %v921_v32 = vld [vmem:[#allocation2 + $0x40] sm:$0xff]   ;;  %v922_v33 = vld [vmem:[#allocation2 + $0x38] sm:$0xff]   ;;  %v923_v34 = vld [vmem:[#allocation2 + $0x30] sm:$0xff]   ;;  %913 = vset.pattern.permute.xlu0 %v969_v7 }
  0x14   :  { %829 = vmatpush3.bf16.msra.mxu1 %v915_v2  ;;  %830 = vmatprep.mubr.msk.bf16.mxu1 %vm74_vm1, %v54_v13  ;;  %v57_v27 = vpack.c.bf16 %v48_v26, %v47_v25  ;;  %v924_v35 = vld [vmem:[#allocation2 + $0x28] sm:$0xff]   ;;  %v925_v36 = vld [vmem:[#allocation2 + $0x20] sm:$0xff]  }
  0x15   :  { %838 = vmatprep.subr.bf16.mxu1 %v967_v0  ;;  %848 = vmatprep.subr.bf16.mxu0 %v967_v0  ;;  %v1057_v38 = vld [vmem:[%s1117_s3] ss:$0 sm:$0xff]  ;;  %v759_v55 = vld [vmem:[%s1117_s3 + $0x3] ss:$0 sm:$0xff] }
  0x16   :  { %201 = vadd.xlane.f32.xlu0 %v194_v31  ;;  %912 = vset.pattern.permute.xlu1 %v969_v7 }
  0x17   :  { %831 = vmatmul.mubr.msk.bf16.vlgmr.msra.gmra.mxu1 %vm74_vm1, %v55_v18  ;;  %849 = vmatpush3.bf16.msra.mxu0 %v919_v23 }
  0x18   :  { %839 = vmatpush3.bf16.msra.mxu1 %v916_v14  ;;  %834 = vmatprep.mubr.msk.bf16.mxu1 %vm74_vm1, %v56_v22 }
  0x19   :  { %840 = vmatprep.subr.bf16.mxu1 %v967_v0  ;;  %850 = vmatprep.subr.bf16.mxu0 %v967_v0 }
  0x1b   :  { %851 = vmatpush3.bf16.msra.mxu0 %v920_v29  ;;  %v1077_v29 = vld [vmem:[%s1117_s3 + $0x2] ss:$0 sm:$0xff] }
  0x1c   :  { %841 = vmatpush3.bf16.msra.mxu1 %v917_v24  ;;  %852 = vmatprep.subr.bf16.mxu0 %v967_v0 }
  0x1d   :  { %866 = vmatprep.subr.bf16.mxu1 %v967_v0 }
  0x1f   :  { %835 = vmatmul.mubr.msk.bf16.gmra.mxu1 %vm74_vm1, %v57_v27  ;;  %853 = vmatpush3.bf16.msra.mxu0 %v921_v32 }
  0x20   :  { %842 = vmatprep.mubr.msk.bf16.mxu1 %vm968_vm0, %v967_v0  ;;  %854 = vmatprep.subr.bf16.mxu0 %v967_v0 }
  0x23   :  { %855 = vmatpush3.bf16.msra.mxu0 %v922_v33 }
  0x24   :  { %856 = vmatprep.subr.bf16.mxu0 %v967_v0 }
  0x27   :  { %843 = vmatmul.mubr.msk.bf16.vlgmr.msra.gmra.mxu1 %vm74_vm1, %v388_v28  ;;  %857 = vmatpush3.bf16.msra.mxu0 %v923_v34 }
  0x28   :  { %882 = vmatprep.mubr.msk.bf16.mxu1 %vm968_vm0, %v967_v0  ;;  %858 = vmatprep.subr.bf16.mxu0 %v967_v0 }
  0x2b   :  { %859 = vmatpush3.bf16.msra.mxu0 %v924_v35 }
  0x2c   :  { %860 = vmatprep.subr.bf16.mxu0 %v967_v0 }
  0x2f   :  { %861 = vmatpush3.bf16.msra.mxu0 %v925_v36 }
  0x30   :  { %886 = vmatprep.subr.bf16.mxu0 %v967_v0 }
  0x9f   :  { %v202_v31 = vpop.xlane.xlu0 %201 }
  0xa0   :  { %v219_v35 = vadd.f32 %v1077_v29, %v202_v31 }
  0xd7   :  { %v832_v37 = vpop.f32.mrf.mxu1 }
  0xd8   :  { %v130_v3 = vadd.f32 %v832_v37, %v1057_v38 }
  0xd9   :  { %v121_v39 = vpop.f32.mrf.mxu1 }
  0xda   :  { %v122_v40 = vadd.f32 %v1057_v38, %v121_v39  ;;  %v752_v39 = vadd.f32 -1.0, %v219_v35 }
  0xdb   :  { %v833_v41 = vpop.f32.mrf.mxu1 }
  0xdc   :  { %v744_v42 = vadd.f32 -1.0, %v122_v40  ;;  %v154_v45 = vmul.f32 -0.5, %v122_v40  ;;  %v133_v14 = vadd.f32 %v833_v41, %v1057_v38 }
  0xdd   :  { %v124_v43 = vpop.f32.mrf.mxu1 }
  0xde   :  { %v152_v44 = vmax.f32 %v744_v42, 0.0  ;;  %v125_v50 = vadd.f32 %v1057_v38, %v124_v43  ;;  %v230_v42 = vmax.f32 %v752_v39, 0.0  ;;  %v926_v43 = vld [vmem:[#allocation2 + $0x98] sm:$0xff]  }
  0xdf   :  { %v836_v46 = vpop.f32.mrf.mxu1  ;;  %867 = vmatpush3.bf16.msra.mxu1 %v926_v43 }
  0xe0   :  { %vm153_vm2 = vcmp.gt.f32.partialorder %v152_v44, 0.0  ;;  %v195_v47 = vmul.f32 %v1045_v30, %v152_v44  ;;  %v232_v44 = vmul.f32 -0.5, %v219_v35  ;;  %vm231_vm7 = vcmp.gt.f32.partialorder %v230_v42, 0.0  ;;  %868 = vmatprep.subr.bf16.mxu1 %v967_v0  ;;  %v928_v46 = vld [vmem:[#allocation2 + $0x88] sm:$0xff]  }
  0xe1   :  { %v155_v48 = vsel %vm153_vm2, %v154_v45, %v122_v40  ;;  %v137_v49 = vpop.f32.mrf.mxu1  ;;  %v927_v45 = vld [vmem:[#allocation2 + $0x90] sm:$0xff]  }
  0xe2   :  { %v156_v51 = vmul.f32 0.9, %v155_v48  ;;  %203 = vadd.xlane.f32.xlu0 %v195_v47  ;;  %v138_v22 = vadd.f32 %v1057_v38, %v137_v49  ;;  %v929_v47 = vld [vmem:[#allocation2 + $0x80] sm:$0xff]   ;;  %v931_v48 = vld [vmem:[#allocation2 + $0x70] sm:$0xff]   ;;  %v932_v49 = vld [vmem:[#allocation2 + $0x68] sm:$0xff]  }
  0xe3   :  { %v837_v52 = vpop.f32.mrf.mxu1  ;;  %869 = vmatpush3.bf16.msra.mxu1 %v927_v45 }
  0xe4   :  { %v157_v53 = vadd.f32 %v156_v51, %v125_v50  ;;  %870 = vmatprep.subr.bf16.mxu1 %v967_v0  ;;  %v933_v50 = vld [vmem:[#allocation2 + $0x60] sm:$0xff]  }
  0xe5   :  { %v140_v54 = vpop.f32.mrf.mxu1 }
  0xe6   :  { %v745_v56 = vadd.f32 -1.0, %v157_v53  ;;  %v161_v60 = vmul.f32 -0.5, %v157_v53  ;;  %v141_v33 = vadd.f32 %v1057_v38, %v140_v54  ;;  %v233_v38 = vsel %vm231_vm7, %v232_v44, %v219_v35  ;;  %v937_v44 = vld [vmem:[#allocation2 + $0xc0] sm:$0xff]  }
  0xe7   :  { %v442_v57 = vpop.f32.mrf.mxu1  ;;  %871 = vmatpush3.bf16.msra.mxu1 %v928_v46  ;;  %v242_v51 = vmul.f32 0.9, %v233_v38 }
  0xe8   :  { %v443_v58 = vadd.f32 %v759_v55, %v442_v57  ;;  %v159_v59 = vmax.f32 %v745_v56, 0.0  ;;  %872 = vmatprep.subr.bf16.mxu1 %v967_v0 }
  0xe9   :  { %v844_v61 = vpop.f32.mrf.mxu1 }
  0xea   :  { %v448_v62 = vmax.f32 %v443_v58, 0.0  ;;  %v196_v63 = vmul.f32 %v1045_v30, %v159_v59  ;;  %vm160_vm3 = vcmp.gt.f32.partialorder %v159_v59, 0.0 }
  0xeb   :  { %v445_v1 = vpop.f32.mrf.mxu1  ;;  %v162_v2 = vsel %vm160_vm3, %v161_v60, %v157_v53  ;;  %873 = vmatpush3.bf16.msra.mxu1 %v929_v47 }
  0xec   :  { %v449_v4 = vpack.c.bf16 %v448_v62, %v448_v62  ;;  %205 = vadd.xlane.f32.xlu1 %v196_v63  ;;  %v163_v5 = vmul.f32 0.9, %v162_v2  ;;  %874 = vmatprep.subr.bf16.mxu1 %v967_v0 }
  0xed   :  { %v845_v6 = vpop.f32.mrf.mxu1 }
  0xee   :  { %863 = vmatmul.mubr.bf16.vlgmr.msra.gmra.mxu0 %v449_v4  ;;  %v164_v8 = vadd.f32 %v163_v5, %v130_v3 }
  0xef   :  { %902 = vmatprep.mubr.msk.bf16.mxu0 %vm968_vm0, %v967_v0 }
  0xf0   :  { %v746_v9 = vadd.f32 -1.0, %v164_v8  ;;  %v168_v11 = vmul.f32 -0.5, %v164_v8 }
  0xf2   :  { %v166_v10 = vmax.f32 %v746_v9, 0.0 }
  0xf4   :  { %v197_v12 = vmul.f32 %v1045_v30, %v166_v10  ;;  %vm167_vm4 = vcmp.gt.f32.partialorder %v166_v10, 0.0 }
  0xf5   :  { %v169_v13 = vsel %vm167_vm4, %v168_v11, %v164_v8 }
  0xf6   :  { %207 = vadd.xlane.f32.xlu1 %v197_v12  ;;  %v170_v15 = vmul.f32 0.9, %v169_v13 }
  0xf8   :  { %v171_v16 = vadd.f32 %v170_v15, %v133_v14 }
  0xfa   :  { %v747_v17 = vadd.f32 -1.0, %v171_v16  ;;  %v175_v19 = vmul.f32 -0.5, %v171_v16 }
  0xfc   :  { %v173_v18 = vmax.f32 %v747_v17, 0.0 }
  0xfe   :  { %v198_v20 = vmul.f32 %v1045_v30, %v173_v18  ;;  %vm174_vm5 = vcmp.gt.f32.partialorder %v173_v18, 0.0 }
  0xff   :  { %v176_v21 = vsel %vm174_vm5, %v175_v19, %v171_v16 }
 0x100   :  { %209 = vadd.xlane.f32.xlu0 %v198_v20  ;;  %v177_v23 = vmul.f32 0.9, %v176_v21 }
 0x102   :  { %v178_v24 = vadd.f32 %v177_v23, %v138_v22 }
 0x104   :  { %v748_v25 = vadd.f32 -1.0, %v178_v24  ;;  %v182_v27 = vmul.f32 -0.5, %v178_v24 }
 0x106   :  { %v180_v26 = vmax.f32 %v748_v25, 0.0 }
 0x108   :  { %v199_v28 = vmul.f32 %v1045_v30, %v180_v26  ;;  %vm181_vm6 = vcmp.gt.f32.partialorder %v180_v26, 0.0 }
 0x109   :  { %v183_v32 = vsel %vm181_vm6, %v182_v27, %v178_v24 }
 0x10a   :  { %211 = vadd.xlane.f32.xlu1 %v199_v28  ;;  %v184_v34 = vmul.f32 0.9, %v183_v32 }
 0x10c   :  { %v185_v36 = vadd.f32 %v184_v34, %v141_v33 }
 0x10e   :  { %v749_v37 = vadd.f32 -1.0, %v185_v36 }
 0x110   :  { %v187_v40 = vmax.f32 %v749_v37, 0.0  ;;  %v934_v37 = vld [vmem:[#allocation2 + $0xd8] sm:$0xff]  }
 0x111   :  { %887 = vmatpush3.bf16.msra.mxu0 %v934_v37 }
 0x112   :  { %v200_v41 = vmul.f32 %v1045_v30, %v187_v40  ;;  %v930_v30 = vld [vmem:[#allocation2 + $0x78] sm:$0xff]   ;;  %v935_v40 = vld [vmem:[#allocation2 + $0xd0] sm:$0xff]   ;;  %888 = vmatprep.subr.bf16.mxu0 %v967_v0 }
 0x113   :  { %875 = vmatpush3.bf16.msra.mxu1 %v930_v30  ;;  %v938_v30 = vld [vmem:[#allocation2 + $0xb8] sm:$0xff]  }
 0x114   :  { %213 = vadd.xlane.f32.xlu0 %v200_v41  ;;  %876 = vmatprep.subr.bf16.mxu1 %v967_v0  ;;  %v936_v41 = vld [vmem:[#allocation2 + $0xc8] sm:$0xff]  }
 0x115   :  { %889 = vmatpush3.bf16.msra.mxu0 %v935_v40 }
 0x116   :  { %890 = vmatprep.subr.bf16.mxu0 %v967_v0 }
 0x117   :  { %877 = vmatpush3.bf16.msra.mxu1 %v931_v48 }
 0x118   :  { %878 = vmatprep.subr.bf16.mxu1 %v967_v0 }
 0x119   :  { %891 = vmatpush3.bf16.msra.mxu0 %v936_v41 }
 0x11a   :  { %892 = vmatprep.subr.bf16.mxu0 %v967_v0 }
 0x11b   :  { %237 = vperm.xlu1 %912, %v233_v38   ;;  %879 = vmatpush3.bf16.msra.mxu1 %v932_v49  ;;  %v939_v49 = vld [vmem:[#allocation2 + $0xb0] sm:$0xff]  }
 0x11c   :  { %880 = vmatprep.subr.bf16.mxu1 %v967_v0 }
 0x11d   :  { %893 = vmatpush3.bf16.msra.mxu0 %v937_v44 }
 0x11e   :  { %894 = vmatprep.subr.bf16.mxu0 %v967_v0 }
 0x11f   :  { %881 = vmatpush3.bf16.msra.mxu1 %v933_v50  ;;  %v940_v50 = vld [vmem:[#allocation2 + $0xa8] sm:$0xff]  }
 0x121   :  { %895 = vmatpush3.bf16.msra.mxu0 %v938_v30 }
 0x122   :  { %896 = vmatprep.subr.bf16.mxu0 %v967_v0 }
 0x125   :  { %897 = vmatpush3.bf16.msra.mxu0 %v939_v49 }
 0x126   :  { %898 = vmatprep.subr.bf16.mxu0 %v967_v0 }
 0x129   :  { %899 = vmatpush3.bf16.msra.mxu0 %v940_v50 }
 0x12a   :  { %900 = vmatprep.subr.bf16.mxu0 %v967_v0 }
 0x16b   :  { %v204_v52 = vpop.xlane.xlu0 %203 }
 0x16c   :  { %v220_v53 = vadd.f32 %v1077_v29, %v204_v52  ;;  %v772_v52 = vld [vmem:[%s1117_s3 + $0x5] ss:$0 sm:$0xff] }
 0x16e   :  { %v243_v54 = vadd.f32 %v242_v51, %v220_v53  ;;  %v941_v51 = vld [vmem:[#allocation2 + $0xa0] sm:$0xff]  }
 0x16f   :  { %901 = vmatpush3.bf16.msra.mxu0 %v941_v51 }
 0x170   :  { %v753_v55 = vadd.f32 -1.0, %v243_v54  ;;  %v247_v57 = vmul.f32 -0.5, %v243_v54 }
 0x172   :  { %v245_v56 = vmax.f32 %v753_v55, 0.0 }
 0x174   :  { %vm246_vm8 = vcmp.gt.f32.partialorder %v245_v56, 0.0 }
 0x175   :  { %v206_v58 = vpop.xlane.xlu1 %205  ;;  %v248_v59 = vsel %vm246_vm8, %v247_v57, %v243_v54 }
 0x176   :  { %v221_v60 = vadd.f32 %v1077_v29, %v206_v58  ;;  %v257_v61 = vmul.f32 0.9, %v248_v59  ;;  %252 = vperm.xlu0 %913, %v248_v59  }
 0x178   :  { %v258_v62 = vadd.f32 %v257_v61, %v221_v60  ;;  %v226_v61 = vlaneseq }
 0x17a   :  { %v754_v63 = vadd.f32 -1.0, %v258_v62  ;;  %v262_v2 = vmul.f32 -0.5, %v258_v62 }
 0x17c   :  { %v260_v1 = vmax.f32 %v754_v63, 0.0  ;;  %v227_v63 = vand.u32 127, %v226_v61 }
 0x17e   :  { %vm261_vm9 = vcmp.gt.f32.partialorder %v260_v1, 0.0  ;;  %vm234_vm14 = vcmp.eq.s32.totalorder %v227_v63, 2  ;;  %vm249_vm15 = vcmp.eq.s32.totalorder %v227_v63, 3  ;;  %vm264_vm0 = vcmp.eq.s32.totalorder %v227_v63, 4 }
 0x17f   :  { %v208_v3 = vpop.xlane.xlu1 %207  ;;  %v263_v4 = vsel %vm261_vm9, %v262_v2, %v258_v62  ;;  %vm279_vm1 = vcmp.eq.s32.totalorder %v227_v63, 5  ;;  %vm294_vm2 = vcmp.eq.s32.totalorder %v227_v63, 6  ;;  %vm309_vm3 = vcmp.eq.s32.totalorder %v227_v63, 7 }
 0x180   :  { %v222_v5 = vadd.f32 %v1077_v29, %v208_v3  ;;  %v272_v6 = vmul.f32 0.9, %v263_v4  ;;  %267 = vperm.xlu1 %912, %v263_v4   ;;  %vm324_vm4 = vcmp.eq.s32.totalorder %v227_v63, 8 }
 0x182   :  { %v273_v7 = vadd.f32 %v272_v6, %v222_v5 }
 0x184   :  { %v755_v8 = vadd.f32 -1.0, %v273_v7  ;;  %v277_v10 = vmul.f32 -0.5, %v273_v7 }
 0x186   :  { %v275_v9 = vmax.f32 %v755_v8, 0.0 }
 0x188   :  { %vm276_vm10 = vcmp.gt.f32.partialorder %v275_v9, 0.0 }
 0x189   :  { %v210_v11 = vpop.xlane.xlu0 %209  ;;  %v278_v12 = vsel %vm276_vm10, %v277_v10, %v273_v7 }
 0x18a   :  { %v223_v13 = vadd.f32 %v1077_v29, %v210_v11  ;;  %v287_v14 = vmul.f32 0.9, %v278_v12  ;;  %282 = vperm.xlu1 %912, %v278_v12  }
 0x18c   :  { %v288_v15 = vadd.f32 %v287_v14, %v223_v13 }
 0x18e   :  { %v756_v16 = vadd.f32 -1.0, %v288_v15  ;;  %v292_v18 = vmul.f32 -0.5, %v288_v15 }
 0x190   :  { %v290_v17 = vmax.f32 %v756_v16, 0.0  ;;  %v781_v16 = vld [vmem:[%s1117_s3 + $0x6] ss:$0 sm:$0xff] }
 0x192   :  { %vm291_vm11 = vcmp.gt.f32.partialorder %v290_v17, 0.0 }
 0x193   :  { %v212_v19 = vpop.xlane.xlu1 %211  ;;  %v293_v20 = vsel %vm291_vm11, %v292_v18, %v288_v15 }
 0x194   :  { %v224_v21 = vadd.f32 %v1077_v29, %v212_v19  ;;  %v302_v22 = vmul.f32 0.9, %v293_v20  ;;  %297 = vperm.xlu1 %912, %v293_v20  }
 0x196   :  { %v303_v23 = vadd.f32 %v302_v22, %v224_v21 }
 0x197   :  { %v238_v60 = vpop.permute.xlu1 %237 }
 0x198   :  { %v757_v24 = vadd.f32 -1.0, %v303_v23  ;;  %v307_v26 = vmul.f32 -0.5, %v303_v23  ;;  %v240_v3 = vsel %vm234_vm14, %v238_v60, 0.0 }
 0x19a   :  { %v305_v25 = vmax.f32 %v757_v24, 0.0 }
 0x19c   :  { %vm306_vm12 = vcmp.gt.f32.partialorder %v305_v25, 0.0 }
 0x19d   :  { %v214_v27 = vpop.xlane.xlu0 %213  ;;  %v308_v28 = vsel %vm306_vm12, %v307_v26, %v303_v23 }
 0x19e   :  { %v225_v31 = vadd.f32 %v1077_v29, %v214_v27  ;;  %312 = vperm.xlu1 %912, %v308_v28   ;;  %v317_v32 = vmul.f32 0.9, %v308_v28  ;;  %v763_v29 = vld [vmem:[%s1117_s3 + $0x4] ss:$0 sm:$0xff] }
 0x1a0   :  { %v318_v33 = vadd.f32 %v317_v32, %v225_v31 }
 0x1a2   :  { %v758_v34 = vadd.f32 -1.0, %v318_v33  ;;  %v322_v36 = vmul.f32 -0.5, %v318_v33 }
 0x1a4   :  { %v320_v35 = vmax.f32 %v758_v34, 0.0 }
 0x1a6   :  { %vm321_vm13 = vcmp.gt.f32.partialorder %v320_v35, 0.0 }
 0x1a7   :  { %v323_v39 = vsel %vm321_vm13, %v322_v36, %v318_v33 }
 0x1a8   :  { %327 = vperm.xlu1 %912, %v323_v39  }
 0x1ae   :  { %v536_v42 = vpop.f32.mrf.mxu0 }
 0x1af   :  { %v537_v43 = vadd.f32 %v763_v29, %v536_v42 }
 0x1b0   :  { %v864_v45 = vpop.f32.mrf.mxu0 }
 0x1b1   :  { %v542_v38 = vmax.f32 %v537_v43, 0.0 }
 0x1b2   :  { %v539_v46 = vpop.f32.mrf.mxu0 }
 0x1b3   :  { %v543_v47 = vpack.c.bf16 %v542_v38, %v542_v38 }
 0x1b4   :  { %v865_v48 = vpop.f32.mrf.mxu0 }
 0x1b5   :  { %883 = vmatmul.mubr.bf16.vlgmr.msra.gmra.mxu1 %v543_v47 }
 0x1f1   :  { %v253_v0 = vpop.permute.xlu0 %252 }
 0x1f2   :  { %v255_v4 = vsel %vm249_vm15, %v253_v0, 0.0 }
 0x1f3   :  { %v256_v6 = vadd.f32 %v255_v4, %v240_v3 }
 0x1fb   :  { %v268_v62 = vpop.permute.xlu1 %267 }
 0x1fc   :  { %v270_v5 = vsel %vm264_vm0, %v268_v62, 0.0 }
 0x1fd   :  { %v271_v9 = vadd.f32 %v270_v5, %v256_v6 }
 0x205   :  { %v283_v1 = vpop.permute.xlu1 %282 }
 0x206   :  { %v285_v8 = vsel %vm279_vm1, %v283_v1, 0.0 }
 0x207   :  { %v286_v11 = vadd.f32 %v285_v8, %v271_v9 }
 0x20f   :  { %v298_v2 = vpop.permute.xlu1 %297 }
 0x210   :  { %v300_v10 = vsel %vm294_vm2, %v298_v2, 0.0 }
 0x211   :  { %v301_v14 = vadd.f32 %v300_v10, %v286_v11 }
 0x219   :  { %v313_v7 = vpop.permute.xlu1 %312 }
 0x21a   :  { %v315_v13 = vsel %vm309_vm3, %v313_v7, 0.0 }
 0x21b   :  { %v316_v17 = vadd.f32 %v315_v13, %v301_v14 }
 0x223   :  { %v328_v12 = vpop.permute.xlu1 %327 }
 0x224   :  { %v330_v15 = vsel %vm324_vm4, %v328_v12, 0.0 }
 0x225   :  { %v331_v19 = vadd.f32 %v330_v15, %v316_v17 }
 0x275   :  { %v630_v53 = vpop.f32.mrf.mxu1 }
 0x276   :  { %v631_v54 = vadd.f32 %v772_v52, %v630_v53 }
 0x277   :  { %v884_v55 = vpop.f32.mrf.mxu1 }
 0x278   :  { %v636_v56 = vmax.f32 %v631_v54, 0.0 }
 0x279   :  { %v633_v57 = vpop.f32.mrf.mxu1 }
 0x27a   :  { %v637_v58 = vpack.c.bf16 %v636_v56, %v636_v56 }
 0x27b   :  { %v885_v59 = vpop.f32.mrf.mxu1 }
 0x27c   :  { %903 = vmatmul.mubr.bf16.vlgmr.msra.gmra.mxu0 %v637_v58 }
 0x33c   :  { %v724_v18 = vpop.f32.mrf.mxu0 }
 0x33d   :  { %v725_v20 = vadd.f32 %v781_v16, %v724_v18 }
 0x33e   :  { %v904_v21 = vpop.f32.mrf.mxu0 }
 0x33f   :  { %v730_v22 = vadd.f32 %v725_v20, %v331_v19 }
 0x340   :  { %v727_v23 = vpop.f32.mrf.mxu0 }
 0x341   :  { %731 = vst [vmem:[%s1118_s4] sm:$0xff] %v730_v22 }
 0x342   :  { %v905_v24 = vpop.f32.mrf.mxu0 }
 0x343   :  { %736 = vsyncpa [#allocation3], 1 }

</bundles_post_ra>
